<compile_context>
chip_gen: v6e
topology: v6e:2x2x1
jax: 0.10.0
libtpu: 0.0.40
codegen_flags: <defaults>
</compile_context>

<pallas_src>
import functools

import jax
import jax.numpy as jnp
from jax import lax
from jax.experimental import pallas as pl
from jax.experimental.pallas import tpu as pltpu


def _round_up(x, m):
    return ((x + m - 1) // m) * m


def _cdiv(a, b):
    return (a + b - 1) // b


def _maybe_pad(a, pads):
    if all(p == (0, 0) for p in pads):
        return a
    return jnp.pad(a, pads)


def _default_vmem_limit_bytes():
    # 3/4 of physical VMEM, capped at 100 MiB:
    #   v7x (64 MiB physical)  -> 48 MiB   (never request the full physical VMEM)
    #   v5e/v6e (128 MiB)      -> 96 MiB
    # Conservative 64 MiB fallback if the hardware query is unavailable.
    try:
        cap = int(pltpu.get_tpu_info().vmem_capacity_bytes)
    except Exception:
        cap = 64 * 1024 * 1024
    return int(min((cap * 3) // 4, 100 * 1024 * 1024))


def _buffered_spec(shape, index_map, nbuf):
    # Deeper pipelining for streamed weight chunks; fall back to default
    # double-buffering if pipeline_mode is unavailable in this JAX version.
    try:
        return pl.BlockSpec(shape, index_map, pipeline_mode=pl.Buffered(nbuf))
    except TypeError:
        return pl.BlockSpec(shape, index_map)


# ----------------------------------------------------------------------------
# Kernels
# ----------------------------------------------------------------------------

def _ffn_resident_oneshot_kernel(x_ref, w1_ref, b1_ref, w2_ref, b2_ref, o_ref):
    # Weights fully VMEM-resident, single d_ff chunk: no accumulator, no pl.when.
    h = jnp.dot(x_ref[...], w1_ref[...], preferred_element_type=jnp.float32)
    h = jnp.maximum(h + b1_ref[...], 0.0)
    # Dropout (inference mode) == identity.
    o = jnp.dot(h.astype(w2_ref.dtype), w2_ref[...], preferred_element_type=jnp.float32)
    o_ref[...] = (o + b2_ref[...]).astype(o_ref.dtype)


def _ffn_resident_chunked_kernel(x_ref, w1_ref, b1_ref, w2_ref, b2_ref, o_ref,
                                 acc_ref, *, n_chunks, tile_ff):
    # Weights fully VMEM-resident; d_ff processed in chunks with an in-kernel loop.
    x = x_ref[...]
    acc_ref[...] = jnp.zeros_like(acc_ref)

    def body(c, carry):
        off = pl.multiple_of(c * tile_ff, tile_ff)
        h = jnp.dot(x, w1_ref[:, pl.ds(off, tile_ff)],
                    preferred_element_type=jnp.float32)
        h = jnp.maximum(h + b1_ref[:, pl.ds(off, tile_ff)], 0.0)
        # Dropout (inference mode) == identity.
        acc_ref[...] += jnp.dot(h.astype(w2_ref.dtype),
                                w2_ref[pl.ds(off, tile_ff), :],
                                preferred_element_type=jnp.float32)
        return carry

    lax.fori_loop(0, n_chunks, body, 0)
    o_ref[...] = (acc_ref[...] + b2_ref[...]).astype(o_ref.dtype)


def _ffn_streaming_kernel(x_ref, w1_ref, b1_ref, w2_ref, b2_ref, o_ref, acc_ref):
    # Fallback: weights streamed in d_ff chunks along grid axis 1 ("arbitrary").
    k = pl.program_id(1)

    @pl.when(k == 0)
    def _init():
        acc_ref[...] = jnp.zeros_like(acc_ref)

    h = jnp.dot(x_ref[...], w1_ref[...], preferred_element_type=jnp.float32)
    h = jnp.maximum(h + b1_ref[...], 0.0)
    # Dropout (inference mode) == identity.
    acc_ref[...] += jnp.dot(h.astype(w2_ref.dtype), w2_ref[...],
                            preferred_element_type=jnp.float32)

    @pl.when(k == pl.num_programs(1) - 1)
    def _finalize():
        o_ref[...] = (acc_ref[...] + b2_ref[...]).astype(o_ref.dtype)


# ----------------------------------------------------------------------------
# Wrapper / factory
# ----------------------------------------------------------------------------

def make_positionwise_feed_forward(w1, b1, w2, b2, *,
                                   compute_dtype=jnp.bfloat16,
                                   out_dtype=None,
                                   tile_m=None,
                                   tile_ff=None,
                                   vmem_limit_bytes=None):
    """Returns apply(x) -> FFN(x).

    w1: (d_model, d_ff), w2: (d_ff, d_model)  -- (in_features, out_features)
    layout, i.e. transposed relative to PyTorch nn.Linear.weight.
    Weight padding / casting is done ONCE here (hoisted out of the hot path).
    """
    d_model, d_ff = w1.shape
    assert w2.shape == (d_ff, d_model)
    assert b1.shape == (d_ff,) and b2.shape == (d_model,)

    if vmem_limit_bytes is None:
        vmem_limit_bytes = _default_vmem_limit_bytes()
    vmem_limit_bytes = int(vmem_limit_bytes)

    comp_isz = jnp.dtype(compute_dtype).itemsize

    # Pad matmul dims to multiples of 256 (v6e/v7x MXU is 256-wide; also fine
    # for v5e's 128) and keep the output last dim lane-dense.
    d_model_p = _round_up(d_model, 256)

    # d_ff chunk size used by the resident in-kernel loop and the streaming
    # grid axis.  Bound the per-chunk intermediate at <= 2048 columns.
    if tile_ff is None:
        n_ff_chunks = max(1, _cdiv(d_ff, 2048))
        tile_ff = _round_up(_cdiv(d_ff, n_ff_chunks), 256)
    else:
        tile_ff = _round_up(tile_ff, 256)
    d_ff_p = _round_up(d_ff, tile_ff)
    n_chunks = d_ff_p // tile_ff

    # ---- one-time weight preparation (no per-call HBM rewrite of W1/W2) ----
    w1p = _maybe_pad(w1, ((0, d_model_p - d_model), (0, d_ff_p - d_ff))).astype(compute_dtype)
    w2p = _maybe_pad(w2, ((0, d_ff_p - d_ff), (0, d_model_p - d_model))).astype(compute_dtype)
    b1p = _maybe_pad(b1, ((0, d_ff_p - d_ff),)).reshape(1, d_ff_p).astype(jnp.float32)
    b2p = _maybe_pad(b2, ((0, d_model_p - d_model),)).reshape(1, d_model_p).astype(jnp.float32)

    w_bytes = int(w1p.size) * comp_isz + int(w2p.size) * comp_isz
    # Keep weights VMEM-resident unless they exceed ~1/3 of the VMEM budget
    # (leaves room for double-buffered residency + activation tiles).
    resident = w_bytes <= vmem_limit_bytes // 3

    def apply(x):
        assert x.shape[-1] == d_model, "last dim of x must equal d_model"
        lead = x.shape[:-1]
        M = 1
        for s in lead:
            M *= int(s)
        out_dt = x.dtype if out_dtype is None else out_dtype
        out_isz = jnp.dtype(out_dt).itemsize

        # ---- row-tile selection --------------------------------------------
        tm = tile_m
        if tm is None:
            tm = min(512, _round_up(M, 8))
            # Keep >=2 row tiles when there is enough work so the "parallel"
            # axis can split across TensorCores (v7x megacore).
            if M > 256 and _round_up(M, tm) // tm < 2:
                tm = _round_up(_cdiv(M, 2), 8)
        tm = max(8, _round_up(int(tm), 8))

        if resident:
            def fits(t):
                act = t * d_model_p * (2 * comp_isz + 2 * out_isz)       # x + out (x2 buf)
                acc = t * d_model_p * 4 if n_chunks > 1 else 0           # f32 accumulator
                inter = t * tile_ff * (4 + comp_isz)                      # h (f32 + cast)
                bias = (d_ff_p + d_model_p) * 4 * 2
                return 2 * w_bytes + act + acc + inter + bias <= vmem_limit_bytes
        else:
            def fits(t):
                fixed = t * d_model_p * (2 * comp_isz + 2 * out_isz + 4)
                wchunk = 2 * d_model_p * tile_ff * comp_isz * 3           # Buffered(3)
                bias = (tile_ff + d_model_p) * 4 * 4
                return fixed + wchunk + bias <= vmem_limit_bytes

        while tm > 64 and not fits(tm):
            tm = _round_up(tm // 2, 8)

        M_p = _round_up(M, tm)
        x2d = _maybe_pad(x.reshape(M, d_model),
                         ((0, M_p - M), (0, d_model_p - d_model))).astype(compute_dtype)

        if resident:
            grid = (M_p // tm,)
            in_specs = [
                pl.BlockSpec((tm, d_model_p), lambda i: (i, 0)),          # x rows
                pl.BlockSpec((d_model_p, d_ff_p), lambda i: (0, 0)),      # W1 (resident)
                pl.BlockSpec((1, d_ff_p), lambda i: (0, 0)),              # b1 (resident)
                pl.BlockSpec((d_ff_p, d_model_p), lambda i: (0, 0)),      # W2 (resident)
                pl.BlockSpec((1, d_model_p), lambda i: (0, 0)),           # b2 (resident)
            ]
            out_spec = pl.BlockSpec((tm, d_model_p), lambda i: (i, 0))
            if n_chunks == 1:
                kernel = _ffn_resident_oneshot_kernel
                scratch = ()
            else:
                kernel = functools.partial(_ffn_resident_chunked_kernel,
                                           n_chunks=n_chunks, tile_ff=tile_ff)
                scratch = (pltpu.VMEM((tm, d_model_p), jnp.float32),)
            dim_sem = ("parallel",)
        else:
            grid = (M_p // tm, n_chunks)
            in_specs = [
                pl.BlockSpec((tm, d_model_p), lambda i, k: (i, 0)),                 # x rows
                _buffered_spec((d_model_p, tile_ff), lambda i, k: (0, k), 3),       # W1 chunk
                pl.BlockSpec((1, tile_ff), lambda i, k: (0, k)),                    # b1 chunk
                _buffered_spec((tile_ff, d_model_p), lambda i, k: (k, 0), 3),       # W2 chunk
                pl.BlockSpec((1, d_model_p), lambda i, k: (0, 0)),                  # b2
            ]
            out_spec = pl.BlockSpec((tm, d_model_p), lambda i, k: (i, 0))
            kernel = _ffn_streaming_kernel
            scratch = (pltpu.VMEM((tm, d_model_p), jnp.float32),)
            dim_sem = ("parallel", "arbitrary")

        out2d = pl.pallas_call(
            kernel,
            out_shape=jax.ShapeDtypeStruct((M_p, d_model_p), out_dt),
            grid_spec=pltpu.PrefetchScalarGridSpec(
                num_scalar_prefetch=0,
                grid=grid,
                in_specs=in_specs,
                out_specs=out_spec,
                scratch_shapes=scratch,
            ),
            compiler_params=pltpu.CompilerParams(
                dimension_semantics=dim_sem,
                vmem_limit_bytes=vmem_limit_bytes,
            ),
        )(x2d, w1p, b1p, w2p, b2p)

        return out2d[:M, :d_model].reshape(*lead, d_model)

    return apply


def positionwise_feed_forward(x, w1, b1, w2, b2, **kwargs):
    """Convenience one-shot wrapper (prefer the factory in hot loops)."""
    return make_positionwise_feed_forward(w1, b1, w2, b2, **kwargs)(x)


def _reference(x, w1, b1, w2, b2):
    h = jnp.maximum(x @ w1 + b1, 0.0)
    return h @ w2 + b2


if __name__ == "__main__":
    # Small, module-consistent shapes: batch=2, seq=8, d_model=32, d_ff=64.
    B, S, d_model, d_ff = 2, 8, 32, 64
    key = jax.random.PRNGKey(0)
    kx, k1, kb1, k2, kb2 = jax.random.split(key, 5)

    x = jax.random.normal(kx, (B, S, d_model), dtype=jnp.float32)

    # Deterministic init mimicking nn.Linear (uniform +/- 1/sqrt(fan_in)).
    lim1 = 1.0 / (d_model ** 0.5)
    lim2 = 1.0 / (d_ff ** 0.5)
    w1 = jax.random.uniform(k1, (d_model, d_ff), jnp.float32, -lim1, lim1)
    b1 = jax.random.uniform(kb1, (d_ff,), jnp.float32, -lim1, lim1)
    w2 = jax.random.uniform(k2, (d_ff, d_model), jnp.float32, -lim2, lim2)
    b2 = jax.random.uniform(kb2, (d_model,), jnp.float32, -lim2, lim2)

    ref = _reference(x, w1, b1, w2, b2)

    # Full-precision path: exact check vs reference.
    ffn_f32 = make_positionwise_feed_forward(w1, b1, w2, b2,
                                             compute_dtype=jnp.float32)
    out_f32 = jax.block_until_ready(ffn_f32(x))
    assert out_f32.shape == (B, S, d_model)
    assert jnp.allclose(out_f32, ref, atol=1e-4, rtol=1e-4), "f32 mismatch vs reference"

    # Performance path: bf16 operands, f32 accumulation (default).
    ffn_bf16 = make_positionwise_feed_forward(w1, b1, w2, b2)
    out_bf16 = jax.block_until_ready(ffn_bf16(x))
    assert out_bf16.shape == (B, S, d_model)
    assert jnp.allclose(out_bf16, ref, atol=5e-2, rtol=5e-2), "bf16 mismatch vs reference"

    print("KERNEL_OK")
</pallas_src>

<mosaic_0001>
module attributes {stable_mosaic.version = 11 : i64} {
  func.func @_ffn_resident_oneshot_kernel(%arg0: i32, %arg1: memref<16x256xf32, #tpu.memory_space<vmem>>, %arg2: memref<256x256xf32, #tpu.memory_space<vmem>>, %arg3: memref<1x256xf32, #tpu.memory_space<vmem>>, %arg4: memref<256x256xf32, #tpu.memory_space<vmem>>, %arg5: memref<1x256xf32, #tpu.memory_space<vmem>>, %arg6: memref<16x256xf32, #tpu.memory_space<vmem>>) attributes {dimension_semantics = [#tpu.dimension_semantics<parallel>], iteration_bounds = array<i64: 1>, scalar_prefetch = 0 : i64, scratch_operands = 0 : i64, tpu.core_type = #tpu.core_type<tc>, window_params = [{transform_indices = @transform_0, window_bounds = array<i64: 16, 256>}, {pipeline_mode = #tpu.pipeline_mode<synchronous>, transform_indices = @transform_1, window_bounds = array<i64: 256, 256>}, {pipeline_mode = #tpu.pipeline_mode<synchronous>, transform_indices = @transform_2, window_bounds = array<i64: 1, 256>}, {pipeline_mode = #tpu.pipeline_mode<synchronous>, transform_indices = @transform_3, window_bounds = array<i64: 256, 256>}, {pipeline_mode = #tpu.pipeline_mode<synchronous>, transform_indices = @transform_4, window_bounds = array<i64: 1, 256>}, {transform_indices = @transform_5, window_bounds = array<i64: 16, 256>}]} {
    %c0 = arith.constant 0 : index
    %c0_0 = arith.constant 0 : index
    %0 = vector.load %arg1[%c0, %c0_0] : memref<16x256xf32, #tpu.memory_space<vmem>>, vector<16x256xf32>
    %c0_1 = arith.constant 0 : index
    %c0_2 = arith.constant 0 : index
    %1 = vector.load %arg2[%c0_1, %c0_2] : memref<256x256xf32, #tpu.memory_space<vmem>>, vector<256x256xf32>
    %cst = arith.constant dense<0.000000e+00> : vector<16x256xf32>
    %2 = tpu.matmul %0, %1, %cst {dimension_numbers = #tpu.dot_dimension_numbers<[1], [0], [0], [1], [0, 0, 1, 1], [], []>} : vector<16x256xf32>, vector<256x256xf32>, vector<16x256xf32> -> vector<16x256xf32>
    %c0_3 = arith.constant 0 : index
    %c0_4 = arith.constant 0 : index
    %3 = vector.load %arg3[%c0_3, %c0_4] : memref<1x256xf32, #tpu.memory_space<vmem>>, vector<1x256xf32>
    %4 = vector.broadcast %3 : vector<1x256xf32> to vector<16x256xf32>
    %5 = arith.addf %2, %4 : vector<16x256xf32>
    %cst_5 = arith.constant 0.000000e+00 : f32
    %6 = vector.broadcast %cst_5 : f32 to vector<16x256xf32>
    %7 = arith.maximumf %5, %6 : vector<16x256xf32>
    %c0_6 = arith.constant 0 : index
    %c0_7 = arith.constant 0 : index
    %8 = vector.load %arg4[%c0_6, %c0_7] : memref<256x256xf32, #tpu.memory_space<vmem>>, vector<256x256xf32>
    %cst_8 = arith.constant dense<0.000000e+00> : vector<16x256xf32>
    %9 = tpu.matmul %7, %8, %cst_8 {dimension_numbers = #tpu.dot_dimension_numbers<[1], [0], [0], [1], [0, 0, 1, 1], [], []>} : vector<16x256xf32>, vector<256x256xf32>, vector<16x256xf32> -> vector<16x256xf32>
    %c0_9 = arith.constant 0 : index
    %c0_10 = arith.constant 0 : index
    %10 = vector.load %arg5[%c0_9, %c0_10] : memref<1x256xf32, #tpu.memory_space<vmem>>, vector<1x256xf32>
    %11 = vector.broadcast %10 : vector<1x256xf32> to vector<16x256xf32>
    %12 = arith.addf %9, %11 : vector<16x256xf32>
    %c0_11 = arith.constant 0 : index
    %c0_12 = arith.constant 0 : index
    %13 = vector.load %arg6[%c0_11, %c0_12] : memref<16x256xf32, #tpu.memory_space<vmem>>, vector<16x256xf32>
    tpu.vector_store %arg6[%c0_11, %c0_12], %12 {strides = array<i32>} : memref<16x256xf32, #tpu.memory_space<vmem>>, vector<16x256xf32>,
    return
  }
  func.func @transform_0(%arg0: i32) -> (i32, i32) {
    %c0_i32 = arith.constant 0 : i32
    %c0_i32_0 = arith.constant 0 : i32
    return %arg0, %c0_i32 : i32, i32
  }
  func.func @transform_1(%arg0: i32) -> (i32, i32) {
    %c0_i32 = arith.constant 0 : i32
    %c0_i32_0 = arith.constant 0 : i32
    %c0_i32_1 = arith.constant 0 : i32
    return %c0_i32, %c0_i32_0 : i32, i32
  }
  func.func @transform_2(%arg0: i32) -> (i32, i32) {
    %c0_i32 = arith.constant 0 : i32
    %c0_i32_0 = arith.constant 0 : i32
    %c0_i32_1 = arith.constant 0 : i32
    return %c0_i32, %c0_i32_0 : i32, i32
  }
  func.func @transform_3(%arg0: i32) -> (i32, i32) {
    %c0_i32 = arith.constant 0 : i32
    %c0_i32_0 = arith.constant 0 : i32
    %c0_i32_1 = arith.constant 0 : i32
    return %c0_i32, %c0_i32_0 : i32, i32
  }
  func.func @transform_4(%arg0: i32) -> (i32, i32) {
    %c0_i32 = arith.constant 0 : i32
    %c0_i32_0 = arith.constant 0 : i32
    %c0_i32_1 = arith.constant 0 : i32
    return %c0_i32, %c0_i32_0 : i32, i32
  }
  func.func @transform_5(%arg0: i32) -> (i32, i32) {
    %c0_i32 = arith.constant 0 : i32
    %c0_i32_0 = arith.constant 0 : i32
    return %arg0, %c0_i32 : i32, i32
  }
}

</mosaic_0001>

<bundles_post_ra>
// kernel: tpu_custom_call.1
= control target key start
LH: loop header
LB: loop body
LE: loop exit
PB: predicated region body
PF: predicated region fallthrough
CT: control target
= control target key end

     0   :  { %10 = vsyncpa [#allocation3], 0  ;;  %s556_s0 = inlined_call_operand.hbm [shape: f32[16,256], index: 0, kind: input, shape index: {}]   ;;  %s557_s1 = inlined_call_operand.hbm [shape: f32[256,256], index: 1, kind: input, shape index: {}]   ;;  %s558_s2 = inlined_call_operand.vmem [shape: f32[1,256], index: 2, kind: input, shape index: {}]   ;;  %s559_s3 = inlined_call_operand.hbm [shape: f32[256,256], index: 3, kind: input, shape index: {}]   ;;  %s560_s4 = inlined_call_operand.vmem [shape: f32[1,256], index: 4, kind: input, shape index: {}]   ;;  %s561_s5 = inlined_call_operand.hbm [shape: f32[16,256], index: 5, kind: output, shape index: {}]  }
   0x1   :  { %11 = vsyncpa [#allocation6], 0 }
   0x2   :  { %12 = vsyncpa [#allocation4], 0  ;;  %s490_s18 = smov [#allocation5]   ;;  %s491_s20 = smov [#allocation2]  }
   0x3   :  { %s30_s19 = sshll.u32 %s490_s18, 4  ;;  %s18_s21 = sshll.u32 %s491_s20, 4  ;;  %s31_s19 = int_to_ptr.vmem [resolvable:$true] %s30_s19  ;;  %s19_s21 = int_to_ptr.vmem [resolvable:$true] %s18_s21 }
   0x4   :  { %s412_s22 = scalar_lea.vmem %s31_s19, 8192  ;;  %p417_p1 = scmp.lt.s32.totalorder %s31_s19, %s31_s19 }
   0x5   :  { %p413_p0 = scmp.ne.s32.totalorder %s31_s19, %s412_s22  ;;  %p418_p2 = scmp.lt.s32.totalorder %s412_s22, %s412_s22 }
   0x7   :  { %p419_p3 = por %p418_p2, %p417_p1 }
   0x9   :  { %p420_p4 = pnand %p419_p3, %p413_p0 }
   0xb   :  { %423 = shalt.err (!%p420_p4)
}
   0xc   :  { %s492_s23 = smov 256   ;;  %s493_s24 = smov 16  }
   0xd   :  { %36 = dma.hbm_to_vmem [thread:$0]  %s557_s1, 8192, %s31_s19, [#allocation6], %s492_s23, %s492_s23, %s493_s24  }
   0xe   :  { %s432_s27 = scalar_lea.vmem %s19_s21, 512  ;;  %p437_p6 = scmp.lt.s32.totalorder %s19_s21, %s19_s21 }
   0xf   :  { %p433_p5 = scmp.ne.s32.totalorder %s19_s21, %s432_s27  ;;  %p438_p7 = scmp.lt.s32.totalorder %s432_s27, %s432_s27 }
  0x11   :  { %p439_p8 = por %p438_p7, %p437_p6 }
  0x13   :  { %p440_p9 = pnand %p439_p8, %p433_p5 }
  0x15   :  { %443 = shalt.err (!%p440_p9)
}
  0x16   :  { %24 = dma.hbm_to_vmem [thread:$0]  %s556_s0, 512, %s19_s21, [#allocation3], %s492_s23, %s492_s23, %s493_s24  }
  0x17   :  { %s494_s30 = smov [#allocation7]  }
  0x18   :  { %s44_s6 = sshll.u32 %s494_s30, 4  ;;  %s45_s6 = int_to_ptr.vmem [resolvable:$true] %s44_s6 }
  0x19   :  { %s452_s7 = scalar_lea.vmem %s45_s6, 8192  ;;  %p457_p11 = scmp.lt.s32.totalorder %s45_s6, %s45_s6 }
  0x1a   :  { %p453_p10 = scmp.ne.s32.totalorder %s45_s6, %s452_s7  ;;  %p458_p12 = scmp.lt.s32.totalorder %s452_s7, %s452_s7 }
  0x1c   :  { %p459_p13 = por %p458_p12, %p457_p11 }
  0x1e   :  { %p460_p0 = pnand %p459_p13, %p453_p10 }
  0x20   :  { %463 = shalt.err (!%p460_p0)
}
  0x21   :  { %50 = dma.hbm_to_vmem [thread:$0]  %s559_s3, 8192, %s45_s6, [#allocation6], %s492_s23, %s492_s23, %s493_s24  }
  0x22   :  { %484 = dma.done.wait [#allocation3], 512  }
  0x23   :  { %485 = vsyncadd [#allocation3], 4294966784 }
  0x24   :  { %486 = dma.done.wait [#allocation6], 16384  }
  0x25   :  { %487 = vsyncadd [#allocation6], 4294950912  ;;  %v97_v0 = vld [vmem:[#allocation5 + $0xf8] sm:$0xff]  ;;  %v96_v1 = vld [vmem:[#allocation5 + $0xf0] sm:$0xff]  ;;  %s495_s10 = smov [#allocation8]  }
  0x26   :  { %v95_v2 = vld [vmem:[#allocation5 + $0xe8] sm:$0xff]  ;;  %142 = vmatprep.subr.mxu0 %v97_v0  ;;  %v94_v3 = vld [vmem:[#allocation5 + $0xe0] sm:$0xff]  ;;  %v93_v4 = vld [vmem:[#allocation5 + $0xd8] sm:$0xff]  ;;  %s385_s11 = sshll.u32 %s495_s10, 4  ;;  %s386_s11 = int_to_ptr.vmem [resolvable:$true] %s385_s11 }
  0x27   :  { %143 = vmatpush1.msra.mxu0 %v96_v1  ;;  %v92_v5 = vld [vmem:[#allocation5 + $0xd0] sm:$0xff]  ;;  %v91_v6 = vld [vmem:[#allocation5 + $0xc8] sm:$0xff]  ;;  %v90_v7 = vld [vmem:[#allocation5 + $0xc0] sm:$0xff]  ;;  %s464_s12 = scalar_lea.vmem %s386_s11, 512  ;;  %p469_p2 = scmp.lt.s32.totalorder %s386_s11, %s386_s11 }
  0x28   :  { %144 = vmatprep.subr.mxu0 %v95_v2  ;;  %v89_v8 = vld [vmem:[#allocation5 + $0xb8] sm:$0xff]  ;;  %v88_v9 = vld [vmem:[#allocation5 + $0xb0] sm:$0xff]  ;;  %v87_v10 = vld [vmem:[#allocation5 + $0xa8] sm:$0xff]  ;;  %p465_p1 = scmp.ne.s32.totalorder %s386_s11, %s464_s12  ;;  %p470_p3 = scmp.lt.s32.totalorder %s464_s12, %s464_s12 }
  0x29   :  { %145 = vmatpush1.msra.mxu0 %v94_v3  ;;  %v86_v11 = vld [vmem:[#allocation5 + $0xa0] sm:$0xff]  ;;  %v85_v12 = vld [vmem:[#allocation5 + $0x98] sm:$0xff]  ;;  %v84_v13 = vld [vmem:[#allocation5 + $0x90] sm:$0xff] }
  0x2a   :  { %146 = vmatprep.subr.mxu0 %v93_v4  ;;  %v83_v14 = vld [vmem:[#allocation5 + $0x88] sm:$0xff]  ;;  %v82_v15 = vld [vmem:[#allocation5 + $0x80] sm:$0xff]  ;;  %v81_v16 = vld [vmem:[#allocation5 + $0x78] sm:$0xff]  ;;  %p471_p4 = por %p470_p3, %p469_p2 }
  0x2b   :  { %147 = vmatpush1.msra.mxu0 %v92_v5  ;;  %v80_v17 = vld [vmem:[#allocation5 + $0x70] sm:$0xff]  ;;  %v79_v18 = vld [vmem:[#allocation5 + $0x68] sm:$0xff]  ;;  %v78_v19 = vld [vmem:[#allocation5 + $0x60] sm:$0xff] }
  0x2c   :  { %148 = vmatprep.subr.mxu0 %v91_v6  ;;  %v77_v20 = vld [vmem:[#allocation5 + $0x58] sm:$0xff]  ;;  %v76_v21 = vld [vmem:[#allocation5 + $0x50] sm:$0xff]  ;;  %v75_v22 = vld [vmem:[#allocation5 + $0x48] sm:$0xff]  ;;  %p472_p5 = pnand %p471_p4, %p465_p1 }
  0x2d   :  { %149 = vmatpush1.msra.mxu0 %v90_v7  ;;  %v74_v23 = vld [vmem:[#allocation5 + $0x40] sm:$0xff]  ;;  %v63_v24 = vld [vmem:[#allocation2 + $0x8] sm:$0xff]  ;;  %v73_v25 = vld [vmem:[#allocation5 + $0x38] sm:$0xff] }
  0x2e   :  { %150 = vmatprep.subr.mxu0 %v89_v8  ;;  %v72_v26 = vld [vmem:[#allocation5 + $0x30] sm:$0xff]  ;;  %206 = vmatprep.mubr.f32.mxu0 %v63_v24  ;;  %v254_v27 = vld [vmem:[#allocation7 + $0xf8] sm:$0xff]  ;;  %v252_v29 = vld [vmem:[#allocation7 + $0xe8] sm:$0xff] }
  0x2f   :  { %151 = vmatpush1.msra.mxu0 %v88_v9  ;;  %299 = vmatprep.subr.mxu1 %v254_v27  ;;  %v253_v28 = vld [vmem:[#allocation7 + $0xf0] sm:$0xff]  ;;  %v251_v30 = vld [vmem:[#allocation7 + $0xe0] sm:$0xff]  ;;  %v71_v31 = vld [vmem:[#allocation5 + $0x28] sm:$0xff] }
  0x30   :  { %152 = vmatprep.subr.mxu0 %v87_v10  ;;  %300 = vmatpush1.msra.mxu1 %v253_v28  ;;  %v250_v32 = vld [vmem:[#allocation7 + $0xd8] sm:$0xff]  ;;  %v70_v33 = vld [vmem:[#allocation5 + $0x20] sm:$0xff]  ;;  %v249_v34 = vld [vmem:[#allocation7 + $0xd0] sm:$0xff] }
  0x31   :  { %153 = vmatpush1.msra.mxu0 %v86_v11  ;;  %301 = vmatprep.subr.mxu1 %v252_v29  ;;  %v69_v35 = vld [vmem:[#allocation5 + $0x18] sm:$0xff]  ;;  %v248_v36 = vld [vmem:[#allocation7 + $0xc8] sm:$0xff]  ;;  %v68_v37 = vld [vmem:[#allocation5 + $0x10] sm:$0xff] }
  0x32   :  { %154 = vmatprep.subr.mxu0 %v85_v12  ;;  %302 = vmatpush1.msra.mxu1 %v251_v30  ;;  %v247_v38 = vld [vmem:[#allocation7 + $0xc0] sm:$0xff]  ;;  %v67_v39 = vld [vmem:[#allocation5 + $0x8] sm:$0xff]  ;;  %v246_v40 = vld [vmem:[#allocation7 + $0xb8] sm:$0xff] }
  0x33   :  { %155 = vmatpush1.msra.mxu0 %v84_v13  ;;  %303 = vmatprep.subr.mxu1 %v250_v32  ;;  %v66_v41 = vld [vmem:[#allocation5] sm:$0xff]  ;;  %v245_v42 = vld [vmem:[#allocation7 + $0xb0] sm:$0xff]  ;;  %v129_v43 = vld [vmem:[#allocation5 + $0x1f8] sm:$0xff] }
  0x34   :  { %156 = vmatprep.subr.mxu0 %v83_v14  ;;  %304 = vmatpush1.msra.mxu1 %v249_v34  ;;  %v244_v44 = vld [vmem:[#allocation7 + $0xa8] sm:$0xff]  ;;  %v128_v45 = vld [vmem:[#allocation5 + $0x1f0] sm:$0xff]  ;;  %v243_v46 = vld [vmem:[#allocation7 + $0xa0] sm:$0xff] }
  0x35   :  { %157 = vmatpush1.msra.mxu0 %v82_v15  ;;  %305 = vmatprep.subr.mxu1 %v248_v36  ;;  %v127_v47 = vld [vmem:[#allocation5 + $0x1e8] sm:$0xff]  ;;  %v242_v48 = vld [vmem:[#allocation7 + $0x98] sm:$0xff]  ;;  %v126_v49 = vld [vmem:[#allocation5 + $0x1e0] sm:$0xff] }
  0x36   :  { %158 = vmatprep.subr.mxu0 %v81_v16  ;;  %306 = vmatpush1.msra.mxu1 %v247_v38  ;;  %v241_v50 = vld [vmem:[#allocation7 + $0x90] sm:$0xff]  ;;  %v125_v51 = vld [vmem:[#allocation5 + $0x1d8] sm:$0xff]  ;;  %v240_v52 = vld [vmem:[#allocation7 + $0x88] sm:$0xff] }
  0x37   :  { %159 = vmatpush1.msra.mxu0 %v80_v17  ;;  %307 = vmatprep.subr.mxu1 %v246_v40  ;;  %v124_v53 = vld [vmem:[#allocation5 + $0x1d0] sm:$0xff]  ;;  %v239_v54 = vld [vmem:[#allocation7 + $0x80] sm:$0xff]  ;;  %v123_v55 = vld [vmem:[#allocation5 + $0x1c8] sm:$0xff] }
  0x38   :  { %160 = vmatprep.subr.mxu0 %v79_v18  ;;  %308 = vmatpush1.msra.mxu1 %v245_v42  ;;  %v238_v56 = vld [vmem:[#allocation7 + $0x78] sm:$0xff]  ;;  %v122_v57 = vld [vmem:[#allocation5 + $0x1c0] sm:$0xff]  ;;  %v237_v58 = vld [vmem:[#allocation7 + $0x70] sm:$0xff] }
  0x39   :  { %161 = vmatpush1.msra.mxu0 %v78_v19  ;;  %309 = vmatprep.subr.mxu1 %v244_v44  ;;  %v121_v59 = vld [vmem:[#allocation5 + $0x1b8] sm:$0xff]  ;;  %v236_v60 = vld [vmem:[#allocation7 + $0x68] sm:$0xff]  ;;  %v120_v61 = vld [vmem:[#allocation5 + $0x1b0] sm:$0xff] }
  0x3a   :  { %162 = vmatprep.subr.mxu0 %v77_v20  ;;  %310 = vmatpush1.msra.mxu1 %v243_v46  ;;  %v235_v62 = vld [vmem:[#allocation7 + $0x60] sm:$0xff]  ;;  %v119_v63 = vld [vmem:[#allocation5 + $0x1a8] sm:$0xff]  ;;  %v234_v0 = vld [vmem:[#allocation7 + $0x58] sm:$0xff] }
  0x3b   :  { %163 = vmatpush1.msra.mxu0 %v76_v21  ;;  %311 = vmatprep.subr.mxu1 %v242_v48  ;;  %v118_v1 = vld [vmem:[#allocation5 + $0x1a0] sm:$0xff]  ;;  %v233_v2 = vld [vmem:[#allocation7 + $0x50] sm:$0xff]  ;;  %v117_v3 = vld [vmem:[#allocation5 + $0x198] sm:$0xff] }
  0x3c   :  { %164 = vmatprep.subr.mxu0 %v75_v22  ;;  %312 = vmatpush1.msra.mxu1 %v241_v50  ;;  %v232_v4 = vld [vmem:[#allocation7 + $0x48] sm:$0xff]  ;;  %v116_v5 = vld [vmem:[#allocation5 + $0x190] sm:$0xff]  ;;  %v231_v6 = vld [vmem:[#allocation7 + $0x40] sm:$0xff] }
  0x3d   :  { %165 = vmatpush1.msra.mxu0 %v74_v23  ;;  %313 = vmatprep.subr.mxu1 %v240_v52  ;;  %v115_v7 = vld [vmem:[#allocation5 + $0x188] sm:$0xff]  ;;  %v230_v8 = vld [vmem:[#allocation7 + $0x38] sm:$0xff]  ;;  %v114_v9 = vld [vmem:[#allocation5 + $0x180] sm:$0xff] }
  0x3e   :  { %166 = vmatprep.subr.mxu0 %v73_v25  ;;  %314 = vmatpush1.msra.mxu1 %v239_v54  ;;  %v229_v10 = vld [vmem:[#allocation7 + $0x30] sm:$0xff]  ;;  %v113_v11 = vld [vmem:[#allocation5 + $0x178] sm:$0xff]  ;;  %v228_v12 = vld [vmem:[#allocation7 + $0x28] sm:$0xff] }
  0x3f   :  { %167 = vmatpush1.msra.mxu0 %v72_v26  ;;  %315 = vmatprep.subr.mxu1 %v238_v56  ;;  %v112_v13 = vld [vmem:[#allocation5 + $0x170] sm:$0xff]  ;;  %v227_v14 = vld [vmem:[#allocation7 + $0x20] sm:$0xff]  ;;  %v111_v15 = vld [vmem:[#allocation5 + $0x168] sm:$0xff] }
  0x40   :  { %168 = vmatprep.subr.mxu0 %v71_v31  ;;  %316 = vmatpush1.msra.mxu1 %v237_v58  ;;  %v226_v16 = vld [vmem:[#allocation7 + $0x18] sm:$0xff]  ;;  %v110_v17 = vld [vmem:[#allocation5 + $0x160] sm:$0xff]  ;;  %v225_v18 = vld [vmem:[#allocation7 + $0x10] sm:$0xff] }
  0x41   :  { %169 = vmatpush1.msra.mxu0 %v70_v33  ;;  %317 = vmatprep.subr.mxu1 %v236_v60  ;;  %v109_v19 = vld [vmem:[#allocation5 + $0x158] sm:$0xff]  ;;  %v224_v20 = vld [vmem:[#allocation7 + $0x8] sm:$0xff]  ;;  %v108_v21 = vld [vmem:[#allocation5 + $0x150] sm:$0xff] }
  0x42   :  { %170 = vmatprep.subr.mxu0 %v69_v35  ;;  %318 = vmatpush1.msra.mxu1 %v235_v62  ;;  %v223_v22 = vld [vmem:[#allocation7] sm:$0xff]  ;;  %v107_v23 = vld [vmem:[#allocation5 + $0x148] sm:$0xff]  ;;  %v286_v24 = vld [vmem:[#allocation7 + $0x1f8] sm:$0xff] }
  0x43   :  { %171 = vmatpush1.msra.mxu0 %v68_v37  ;;  %319 = vmatprep.subr.mxu1 %v234_v0  ;;  %v106_v25 = vld [vmem:[#allocation5 + $0x140] sm:$0xff]  ;;  %v285_v26 = vld [vmem:[#allocation7 + $0x1f0] sm:$0xff]  ;;  %v105_v27 = vld [vmem:[#allocation5 + $0x138] sm:$0xff] }
  0x44   :  { %172 = vmatprep.subr.mxu0 %v67_v39  ;;  %320 = vmatpush1.msra.mxu1 %v233_v2  ;;  %v284_v28 = vld [vmem:[#allocation7 + $0x1e8] sm:$0xff]  ;;  %v104_v29 = vld [vmem:[#allocation5 + $0x130] sm:$0xff]  ;;  %v283_v30 = vld [vmem:[#allocation7 + $0x1e0] sm:$0xff] }
  0x45   :  { %173 = vmatpush1.msra.mxu0 %v66_v41  ;;  %321 = vmatprep.subr.mxu1 %v232_v4  ;;  %v103_v31 = vld [vmem:[#allocation5 + $0x128] sm:$0xff]  ;;  %v282_v32 = vld [vmem:[#allocation7 + $0x1d8] sm:$0xff]  ;;  %v102_v33 = vld [vmem:[#allocation5 + $0x120] sm:$0xff]  ;;  %v132_v4 = vlaneseq }
  0x46   :  { %174 = vmatprep.subr.mxu0 %v129_v43  ;;  %322 = vmatpush1.msra.mxu1 %v231_v6  ;;  %v281_v34 = vld [vmem:[#allocation7 + $0x1d0] sm:$0xff]  ;;  %v101_v35 = vld [vmem:[#allocation5 + $0x118] sm:$0xff]  ;;  %v280_v36 = vld [vmem:[#allocation7 + $0x1c8] sm:$0xff] }
  0x47   :  { %175 = vmatpush2.msra.mxu0 %v128_v45  ;;  %323 = vmatprep.subr.mxu1 %v230_v8  ;;  %v100_v37 = vld [vmem:[#allocation5 + $0x110] sm:$0xff]  ;;  %v279_v38 = vld [vmem:[#allocation7 + $0x1c0] sm:$0xff]  ;;  %v99_v39 = vld [vmem:[#allocation5 + $0x108] sm:$0xff] }
  0x48   :  { %176 = vmatprep.subr.mxu0 %v127_v47  ;;  %324 = vmatpush1.msra.mxu1 %v229_v10  ;;  %v278_v40 = vld [vmem:[#allocation7 + $0x1b8] sm:$0xff]  ;;  %v98_v41 = vld [vmem:[#allocation5 + $0x100] sm:$0xff]  ;;  %v277_v42 = vld [vmem:[#allocation7 + $0x1b0] sm:$0xff] }
  0x49   :  { %177 = vmatpush2.msra.mxu0 %v126_v49  ;;  %325 = vmatprep.subr.mxu1 %v228_v12  ;;  %v62_v43 = vld [vmem:[#allocation2] sm:$0xff]  ;;  %v276_v44 = vld [vmem:[#allocation7 + $0x1a8] sm:$0xff]  ;;  %v65_v45 = vld [vmem:[#allocation2 + $0x18] sm:$0xff] }
  0x4a   :  { %178 = vmatprep.subr.mxu0 %v125_v51  ;;  %326 = vmatpush1.msra.mxu1 %v227_v14  ;;  %v275_v46 = vld [vmem:[#allocation7 + $0x1a0] sm:$0xff]  ;;  %v274_v47 = vld [vmem:[#allocation7 + $0x198] sm:$0xff]  ;;  %v273_v48 = vld [vmem:[#allocation7 + $0x190] sm:$0xff] }
  0x4b   :  { %179 = vmatpush2.msra.mxu0 %v124_v53  ;;  %327 = vmatprep.subr.mxu1 %v226_v16  ;;  %v64_v49 = vld [vmem:[#allocation2 + $0x10] sm:$0xff]  ;;  %v272_v50 = vld [vmem:[#allocation7 + $0x188] sm:$0xff]  ;;  %v271_v51 = vld [vmem:[#allocation7 + $0x180] sm:$0xff] }
  0x4c   :  { %180 = vmatprep.subr.mxu0 %v123_v55  ;;  %328 = vmatpush1.msra.mxu1 %v225_v18  ;;  %v270_v52 = vld [vmem:[#allocation7 + $0x178] sm:$0xff]  ;;  %v269_v53 = vld [vmem:[#allocation7 + $0x170] sm:$0xff]  ;;  %v268_v54 = vld [vmem:[#allocation7 + $0x168] sm:$0xff] }
  0x4d   :  { %181 = vmatpush2.msra.mxu0 %v122_v57  ;;  %329 = vmatprep.subr.mxu1 %v224_v20  ;;  %v267_v55 = vld [vmem:[#allocation7 + $0x160] sm:$0xff]  ;;  %v266_v56 = vld [vmem:[#allocation7 + $0x158] sm:$0xff]  ;;  %v265_v57 = vld [vmem:[#allocation7 + $0x150] sm:$0xff] }
  0x4e   :  { %182 = vmatprep.subr.mxu0 %v121_v59  ;;  %330 = vmatpush1.msra.mxu1 %v223_v22  ;;  %v264_v58 = vld [vmem:[#allocation7 + $0x148] sm:$0xff]  ;;  %v263_v59 = vld [vmem:[#allocation7 + $0x140] sm:$0xff]  ;;  %v262_v60 = vld [vmem:[#allocation7 + $0x138] sm:$0xff] }
  0x4f   :  { %183 = vmatpush2.msra.mxu0 %v120_v61  ;;  %331 = vmatprep.subr.mxu1 %v286_v24  ;;  %v261_v61 = vld [vmem:[#allocation7 + $0x130] sm:$0xff]  ;;  %v260_v62 = vld [vmem:[#allocation7 + $0x128] sm:$0xff]  ;;  %v258_v0 = vld [vmem:[#allocation7 + $0x118] sm:$0xff] }
  0x50   :  { %184 = vmatprep.subr.mxu0 %v119_v63  ;;  %332 = vmatpush2.msra.mxu1 %v285_v26  ;;  %v259_v63 = vld [vmem:[#allocation7 + $0x120] sm:$0xff]  ;;  %v256_v2 = vld [vmem:[#allocation7 + $0x108] sm:$0xff] }
  0x51   :  { %185 = vmatpush2.msra.mxu0 %v118_v1  ;;  %333 = vmatprep.subr.mxu1 %v284_v28  ;;  %v257_v1 = vld [vmem:[#allocation7 + $0x110] sm:$0xff] }
  0x52   :  { %186 = vmatprep.subr.mxu0 %v117_v3  ;;  %334 = vmatpush2.msra.mxu1 %v283_v30  ;;  %v255_v3 = vld [vmem:[#allocation7 + $0x100] sm:$0xff] }
  0x53   :  { %187 = vmatpush2.msra.mxu0 %v116_v5  ;;  %335 = vmatprep.subr.mxu1 %v282_v32  ;;  %v133_v5 = vshrl.u32 %v132_v4, 7 }
  0x54   :  { %188 = vmatprep.subr.mxu0 %v115_v7  ;;  %336 = vmatpush2.msra.mxu1 %v281_v34  ;;  %v130_v7 = vld [vmem:[%s558_s2] sm:$0x3] }
  0x55   :  { %189 = vmatpush2.msra.mxu0 %v114_v9  ;;  %337 = vmatprep.subr.mxu1 %v280_v36  ;;  %v134_v6 = vsub.s32 0, %v133_v5  ;;  %v138_v8 = vsub.s32 1, %v133_v5 }
  0x56   :  { %190 = vmatprep.subr.mxu0 %v113_v11  ;;  %338 = vmatpush2.msra.mxu1 %v279_v38 }
  0x57   :  { %191 = vmatpush2.msra.mxu0 %v112_v13  ;;  %339 = vmatprep.subr.mxu1 %v278_v40  ;;  %v135_v9 = vrot.slane %v130_v7, %v134_v6  ;;  %v139_v10 = vrot.slane %v130_v7, %v138_v8 }
  0x58   :  { %192 = vmatprep.subr.mxu0 %v111_v15  ;;  %340 = vmatpush2.msra.mxu1 %v277_v42 }
  0x59   :  { %193 = vmatpush2.msra.mxu0 %v110_v17  ;;  %341 = vmatprep.subr.mxu1 %v276_v44 }
  0x5a   :  { %194 = vmatprep.subr.mxu0 %v109_v19  ;;  %342 = vmatpush2.msra.mxu1 %v275_v46 }
  0x5b   :  { %195 = vmatpush2.msra.mxu0 %v108_v21  ;;  %343 = vmatprep.subr.mxu1 %v274_v47 }
  0x5c   :  { %196 = vmatprep.subr.mxu0 %v107_v23  ;;  %344 = vmatpush2.msra.mxu1 %v273_v48  ;;  %v287_v23 = vld [vmem:[%s560_s4] sm:$0x3] }
  0x5d   :  { %197 = vmatpush2.msra.mxu0 %v106_v25  ;;  %345 = vmatprep.subr.mxu1 %v272_v50  ;;  %v292_v24 = vrot.slane %v287_v23, %v134_v6  ;;  %v296_v25 = vrot.slane %v287_v23, %v138_v8 }
  0x5e   :  { %198 = vmatprep.subr.mxu0 %v105_v27  ;;  %346 = vmatpush2.msra.mxu1 %v271_v51 }
  0x5f   :  { %199 = vmatpush2.msra.mxu0 %v104_v29  ;;  %347 = vmatprep.subr.mxu1 %v270_v52 }
  0x60   :  { %200 = vmatprep.subr.mxu0 %v103_v31  ;;  %348 = vmatpush2.msra.mxu1 %v269_v53 }
  0x61   :  { %201 = vmatpush2.msra.mxu0 %v102_v33  ;;  %349 = vmatprep.subr.mxu1 %v268_v54 }
  0x62   :  { %202 = vmatprep.subr.mxu0 %v101_v35  ;;  %350 = vmatpush2.msra.mxu1 %v267_v55 }
  0x63   :  { %203 = vmatpush2.msra.mxu0 %v100_v37  ;;  %351 = vmatprep.subr.mxu1 %v266_v56 }
  0x64   :  { %204 = vmatprep.subr.mxu0 %v99_v39  ;;  %352 = vmatpush2.msra.mxu1 %v265_v57 }
  0x65   :  { %205 = vmatpush2.msra.mxu0 %v98_v41  ;;  %353 = vmatprep.subr.mxu1 %v264_v58 }
  0x66   :  { %207 = vmatmul.mubr.f32.vlgmr.msra.gmra.mxu0 %v62_v43  ;;  %354 = vmatpush2.msra.mxu1 %v263_v59 }
  0x67   :  { %212 = vmatprep.mubr.f32.mxu0 %v65_v45  ;;  %355 = vmatprep.subr.mxu1 %v262_v60 }
  0x68   :  { %356 = vmatpush2.msra.mxu1 %v261_v61 }
  0x69   :  { %357 = vmatprep.subr.mxu1 %v260_v62 }
  0x6a   :  { %213 = vmatmul.mubr.f32.gmra.mxu0 %v64_v49  ;;  %358 = vmatpush2.msra.mxu1 %v259_v63 }
  0x6b   :  { %359 = vmatprep.subr.mxu1 %v258_v0 }
  0x6c   :  { %360 = vmatpush2.msra.mxu1 %v257_v1 }
  0x6d   :  { %361 = vmatprep.subr.mxu1 %v256_v2 }
  0x6e   :  { %362 = vmatpush2.msra.mxu1 %v255_v3 }
 0x126   :  { %v208_v11 = vpop.f32.mrf.mxu0 }
 0x127   :  { %v209_v12 = vadd.f32 %v208_v11, %v135_v9 }
 0x128   :  { %v210_v13 = vpop.f32.mrf.mxu0 }
 0x129   :  { %v211_v14 = vadd.f32 %v210_v13, %v139_v10  ;;  %v219_v17 = vmax.f32 %v209_v12, 0.0 }
 0x12a   :  { %v214_v15 = vpop.f32.mrf.mxu0 }
 0x12b   :  { %v220_v16 = vmax.f32 %v211_v14, 0.0  ;;  %v215_v18 = vadd.f32 %v214_v15, %v135_v9 }
 0x12c   :  { %v216_v19 = vpop.f32.mrf.mxu0 }
 0x12d   :  { %v217_v20 = vadd.f32 %v216_v19, %v139_v10  ;;  %363 = vmatprep.mubr.f32.mxu1 %v220_v16  ;;  %v221_v22 = vmax.f32 %v215_v18, 0.0 }
 0x12e   :  { %364 = vmatmul.mubr.f32.vlgmr.msra.gmra.mxu1 %v219_v17 }
 0x12f   :  { %v222_v21 = vmax.f32 %v217_v20, 0.0 }
 0x131   :  { %369 = vmatprep.mubr.f32.mxu1 %v222_v21 }
 0x132   :  { %370 = vmatmul.mubr.f32.gmra.mxu1 %v221_v22 }
 0x1ee   :  { %v365_v26 = vpop.f32.mrf.mxu1 }
 0x1ef   :  { %v366_v27 = vadd.f32 %v365_v26, %v292_v24 }
 0x1f0   :  { %v367_v28 = vpop.f32.mrf.mxu1 }
 0x1f1   :  { %376 = vst [vmem:[#allocation8] sm:$0xff] %v366_v27  ;;  %v368_v29 = vadd.f32 %v367_v28, %v296_v25 }
 0x1f2   :  { %v371_v30 = vpop.f32.mrf.mxu1 }
 0x1f3   :  { %377 = vst [vmem:[#allocation8 + $0x8] sm:$0xff] %v368_v29  ;;  %v372_v31 = vadd.f32 %v371_v30, %v292_v24 }
 0x1f4   :  { %v373_v32 = vpop.f32.mrf.mxu1 }
 0x1f5   :  { %378 = vst [vmem:[#allocation8 + $0x10] sm:$0xff] %v372_v31  ;;  %v374_v33 = vadd.f32 %v373_v32, %v296_v25 }
 0x1f7   :  { %379 = vst [vmem:[#allocation8 + $0x18] sm:$0xff] %v374_v33 }
 0x1f8   :  { %475 = shalt.err (!%p472_p5)
}
 0x1f9   :  { %391 = dma.vmem_to_hbm [thread:$0]  %s386_s11, 512, %s561_s5, [#allocation4], %s492_s23, %s492_s23, %s493_s24  }
 0x1fa   :  { %488 = dma.done.wait [#allocation4], 512  }
 0x1fb   :  { %489 = vsyncadd [#allocation4], 4294966784 }
 0x1fc   :  { %395 = vsyncpa [#allocation3], 1 }
 0x1fd   :  { %396 = vsyncpa [#allocation6], 1 }
 0x1fe   :  { %397 = vsyncpa [#allocation4], 1 }

</bundles_post_ra>
